<compile_context>
chip_gen: v7x
topology: tpu7x:2x2x1
jax: 0.10.0
libtpu: 0.0.40
codegen_flags: <defaults>
</compile_context>

<pallas_src>
import functools

import jax
import jax.numpy as jnp
from jax.experimental import pallas as pl
from jax.experimental.pallas import tpu as pltpu


def _deep_rnn_kernel(T, B, L, H, O,
                     x_ref, h0_ref,
                     w1_ref, wih3_ref, whh3_ref, w2_ref, bias_ref,
                     out_ref, hN_ref,
                     gi_s, h_all_s):
    """x_ref: (T*B, Din); h0_ref: (B, H); out_ref: (T*B, O); hN_ref: (B, H).

    wih3_ref: (L, 3H) = [Wih_r | Wih_z | Wih_n]   (transposed vs PyTorch)
    whh3_ref: (H, 3H) = [Whh_r | Whh_z | Whh_n]
    bias_ref: (4, lanes) rows = [b1 | (bih_r+bhh_r, bih_z+bhh_z, bih_n) | bhh_n | b2]
    """
    f32 = jnp.float32

    # ---- Unpack the packed bias operand (one masked load each, done once).
    b1 = bias_ref[0:1, :L]           # (1, L)
    bi3 = bias_ref[1:2, :3 * H]      # (1, 3H)  r/z parts already include bhh_r/bhh_z
    bhn = bias_ref[2:3, :H]          # (1, H)
    b2 = bias_ref[3:4, :O]           # (1, O)

    # ---- Hoisted pre-pass over all T*B rows: linear1 + ReLU, then ONE fused
    #      input-to-hidden gate matmul (gate order r, z, n along the 3H axis).
    h1 = jnp.maximum(
        jnp.dot(x_ref[...], w1_ref[...], preferred_element_type=f32) + b1,
        0.0)                                                           # (T*B, L)
    gi_s[...] = jnp.dot(h1, wih3_ref[...], preferred_element_type=f32) + bi3

    # Hoist the (1,H)->(B,H) broadcast of bhh_n out of the recurrence.
    bhn_b = jnp.broadcast_to(bhn, (B, H))

    # ---- Serial GRU recurrence: one (B,H)@(H,3H) MXU op + gate math per step.
    def step(t, h):
        row = pl.multiple_of(t * B, B)
        gh = jnp.dot(h, whh3_ref[...], preferred_element_type=f32)    # (B, 3H)
        gi = gi_s[pl.ds(row, B), :]                                   # (B, 3H)
        # sigmoid(x) == 0.5*tanh(0.5*x) + 0.5 : one EUP op covers both r and z.
        rz = 0.5 * jnp.tanh(0.5 * (gi[:, :2 * H] + gh[:, :2 * H])) + 0.5
        r = rz[:, :H]
        z = rz[:, H:]
        n = jnp.tanh(gi[:, 2 * H:] + r * (gh[:, 2 * H:] + bhn_b))
        h_new = n + z * (h - n)                                       # == (1-z)*n + z*h
        h_all_s[pl.ds(row, B), :] = h_new
        return h_new

    h_last = jax.lax.fori_loop(0, T, step, h0_ref[...], unroll=min(T, 8))
    hN_ref[...] = h_last                                              # written once

    # ---- Deferred output head: one batched ReLU + matmul + single store.
    out_ref[...] = (jnp.dot(jnp.maximum(h_all_s[...], 0.0), w2_ref[...],
                            preferred_element_type=f32) + b2)


def pack_params(params):
    """Pack per-gate weights/biases into the fused kernel layout (do this once)."""
    L = params["w1_t"].shape[1]
    H = params["whh_r_t"].shape[1]
    O = params["w2_t"].shape[1]

    wih3 = jnp.concatenate(
        [params["wih_r_t"], params["wih_z_t"], params["wih_n_t"]], axis=1)   # (L, 3H)
    whh3 = jnp.concatenate(
        [params["whh_r_t"], params["whh_z_t"], params["whh_n_t"]], axis=1)   # (H, 3H)

    # Fold the hidden-side r/z biases into the input-side biases (pre-pass constant);
    # bhh_n must stay separate (it lives inside r * (...)).
    bi3 = jnp.concatenate([params["bih_r"] + params["bhh_r"],
                           params["bih_z"] + params["bhh_z"],
                           params["bih_n"]], axis=1)                          # (1, 3H)

    lanes = max(128, -(-max(L, 3 * H, O) // 128) * 128)

    def pad_row(v):
        return jnp.pad(v, ((0, 0), (0, lanes - v.shape[1])))

    biases = jnp.concatenate(
        [pad_row(params["b1"]), pad_row(bi3),
         pad_row(params["bhh_n"]), pad_row(params["b2"])], axis=0)            # (4, lanes)

    return {"w1_t": params["w1_t"], "wih3_t": wih3, "whh3_t": whh3,
            "w2_t": params["w2_t"], "biases": biases,
            "dims": (L, H, O)}


def _run_deep_rnn(x, h0, packed):
    """x: (T, B, Din) f32, h0: (1, B, H) f32 -> (out (T,B,O), new_hidden (1,B,H))."""
    T, B, Din = x.shape
    L, H, O = packed["dims"]

    x_flat = x.reshape(T * B, Din)        # free reshape outside the kernel
    h0_2d = h0[0]                         # (B, H)

    # Resident-VMEM estimate: raise the scoped limit only when it matters
    # (capped at v7x's 64 MiB physical VMEM).
    vmem_need = 4 * (T * B) * (4 * H + Din + O) + (1 << 20)
    compiler_params = None
    if 2 * vmem_need > (16 << 20):
        compiler_params = pltpu.CompilerParams(
            vmem_limit_bytes=int(min(2 * vmem_need, 64 << 20)))

    kernel = functools.partial(_deep_rnn_kernel, T, B, L, H, O)
    out_flat, hN = pl.pallas_call(
        kernel,
        out_shape=(jax.ShapeDtypeStruct((T * B, O), jnp.float32),
                   jax.ShapeDtypeStruct((B, H), jnp.float32)),
        scratch_shapes=[
            pltpu.VMEM((T * B, 3 * H), jnp.float32),   # fused gi (r|z|n) for all steps
            pltpu.VMEM((T * B, H), jnp.float32),       # all per-step hidden states
        ],
        compiler_params=compiler_params,
    )(x_flat, h0_2d,
      packed["w1_t"], packed["wih3_t"], packed["whh3_t"], packed["w2_t"],
      packed["biases"])
    return out_flat.reshape(T, B, O), hN[None]


def deep_rnn_forward(packed_params, x, hidden_state=None):
    """Mirrors DeepRNN.forward semantics (time-major sequences or single 2-D step)."""
    _, H, _ = packed_params["dims"]
    x = jnp.asarray(x, jnp.float32)
    if x.ndim == 2:
        x = x[None]                        # (1, B, Din)
    if hidden_state is None:
        # Batch dim is x.shape[1] after unsqueeze; identical to PyTorch for the
        # 2-D-input path (the only None-hidden path the original module supports).
        hidden_state = jnp.zeros((1, x.shape[1], H), jnp.float32)
    out, new_h = _run_deep_rnn(x, jnp.asarray(hidden_state, jnp.float32),
                               packed_params)
    if out.shape[0] == 1:
        out = out[0]
    return out, new_h


def init_params(key, input_dim, linear_dim, hidden_dim, output_dim):
    """Deterministic init mimicking PyTorch default uniform(-1/sqrt(fan), 1/sqrt(fan)).

    GRU weights/biases are stored transposed and split per gate (r, z, n)."""
    ks = jax.random.split(key, 16)

    def u(k, shape, fan):
        b = 1.0 / jnp.sqrt(fan)
        return jax.random.uniform(k, shape, jnp.float32, -b, b)

    return {
        "w1_t":    u(ks[0],  (input_dim, linear_dim), input_dim),
        "b1":      u(ks[1],  (1, linear_dim), input_dim),
        "wih_r_t": u(ks[2],  (linear_dim, hidden_dim), hidden_dim),
        "wih_z_t": u(ks[3],  (linear_dim, hidden_dim), hidden_dim),
        "wih_n_t": u(ks[4],  (linear_dim, hidden_dim), hidden_dim),
        "whh_r_t": u(ks[5],  (hidden_dim, hidden_dim), hidden_dim),
        "whh_z_t": u(ks[6],  (hidden_dim, hidden_dim), hidden_dim),
        "whh_n_t": u(ks[7],  (hidden_dim, hidden_dim), hidden_dim),
        "bih_r":   u(ks[8],  (1, hidden_dim), hidden_dim),
        "bih_z":   u(ks[9],  (1, hidden_dim), hidden_dim),
        "bih_n":   u(ks[10], (1, hidden_dim), hidden_dim),
        "bhh_r":   u(ks[11], (1, hidden_dim), hidden_dim),
        "bhh_z":   u(ks[12], (1, hidden_dim), hidden_dim),
        "bhh_n":   u(ks[13], (1, hidden_dim), hidden_dim),
        "w2_t":    u(ks[14], (hidden_dim, output_dim), hidden_dim),
        "b2":      u(ks[15], (1, output_dim), hidden_dim),
    }


def _reference_forward(params, x, hidden_state=None):
    """Pure-JAX reference of the same semantics, for verification."""
    H = params["whh_r_t"].shape[1]
    x = jnp.asarray(x, jnp.float32)
    if x.ndim == 2:
        x = x[None]
    if hidden_state is None:
        hidden_state = jnp.zeros((1, x.shape[1], H), jnp.float32)
    h1 = jax.nn.relu(x @ params["w1_t"] + params["b1"][0])           # (T,B,L)

    def step(h, xt):
        r = jax.nn.sigmoid(xt @ params["wih_r_t"] + params["bih_r"][0]
                           + h @ params["whh_r_t"] + params["bhh_r"][0])
        z = jax.nn.sigmoid(xt @ params["wih_z_t"] + params["bih_z"][0]
                           + h @ params["whh_z_t"] + params["bhh_z"][0])
        n = jnp.tanh(xt @ params["wih_n_t"] + params["bih_n"][0]
                     + r * (h @ params["whh_n_t"] + params["bhh_n"][0]))
        h_new = (1.0 - z) * n + z * h
        return h_new, h_new

    h_last, hs = jax.lax.scan(step, hidden_state[0], h1)
    out = jax.nn.relu(hs) @ params["w2_t"] + params["b2"][0]
    if out.shape[0] == 1:
        out = out[0]
    return out, h_last[None]


if __name__ == "__main__":
    key = jax.random.PRNGKey(0)
    kp, kx2, kx3 = jax.random.split(key, 3)

    INPUT_DIM, LINEAR_DIM, HIDDEN_DIM, OUTPUT_DIM = 32, 64, 32, 16
    BATCH, SEQ = 8, 8

    params = init_params(kp, INPUT_DIM, LINEAR_DIM, HIDDEN_DIM, OUTPUT_DIM)
    packed = pack_params(params)          # fuse/pack once, reuse for every call

    # Case 1: 2D input (batch, input_dim), hidden_state=None (typical RL step path)
    x2d = jax.random.normal(kx2, (BATCH, INPUT_DIM), jnp.float32)
    out2, h2 = deep_rnn_forward(packed, x2d)

    # Case 2: 3D time-major sequence (seq, batch, input_dim) with carried hidden state
    x3d = jax.random.normal(kx3, (SEQ, BATCH, INPUT_DIM), jnp.float32)
    out3, h3 = deep_rnn_forward(packed, x3d, h2)

    jax.block_until_ready((out2, h2, out3, h3))

    # Verify against a pure-JAX reference implementation.
    r_out2, r_h2 = _reference_forward(params, x2d)
    r_out3, r_h3 = _reference_forward(params, x3d, r_h2)
    assert jnp.allclose(out2, r_out2, atol=1e-4), "2D output mismatch"
    assert jnp.allclose(h2, r_h2, atol=1e-4), "2D hidden mismatch"
    assert jnp.allclose(out3, r_out3, atol=1e-4), "3D output mismatch"
    assert jnp.allclose(h3, r_h3, atol=1e-4), "3D hidden mismatch"

    print("KERNEL_OK")
</pallas_src>

<mosaic_0001>
module attributes {stable_mosaic.version = 11 : i64} {
  func.func @_deep_rnn_kernel(%arg0: memref<8x32xf32, #tpu.memory_space<vmem>>, %arg1: memref<8x32xf32, #tpu.memory_space<vmem>>, %arg2: memref<32x64xf32, #tpu.memory_space<vmem>>, %arg3: memref<64x96xf32, #tpu.memory_space<vmem>>, %arg4: memref<32x96xf32, #tpu.memory_space<vmem>>, %arg5: memref<32x16xf32, #tpu.memory_space<vmem>>, %arg6: memref<4x128xf32, #tpu.memory_space<vmem>>, %arg7: memref<8x16xf32, #tpu.memory_space<vmem>>, %arg8: memref<8x32xf32, #tpu.memory_space<vmem>>, %arg9: memref<8x96xf32, #tpu.memory_space<vmem>>, %arg10: memref<8x32xf32, #tpu.memory_space<vmem>>) attributes {dimension_semantics = [], scalar_prefetch = 0 : i64, scratch_operands = 2 : i64, tpu.core_type = #tpu.core_type<tc>} {
    %c0 = arith.constant 0 : index
    %c0_0 = arith.constant 0 : index
    %0 = vector.load %arg6[%c0, %c0_0] : memref<4x128xf32, #tpu.memory_space<vmem>>, vector<1x64xf32>
    %c1 = arith.constant 1 : index
    %c0_1 = arith.constant 0 : index
    %1 = vector.load %arg6[%c1, %c0_1] : memref<4x128xf32, #tpu.memory_space<vmem>>, vector<1x96xf32>
    %c2 = arith.constant 2 : index
    %c0_2 = arith.constant 0 : index
    %2 = vector.load %arg6[%c2, %c0_2] : memref<4x128xf32, #tpu.memory_space<vmem>>, vector<1x32xf32>
    %c3 = arith.constant 3 : index
    %c0_3 = arith.constant 0 : index
    %3 = vector.load %arg6[%c3, %c0_3] : memref<4x128xf32, #tpu.memory_space<vmem>>, vector<1x16xf32>
    %c0_4 = arith.constant 0 : index
    %c0_5 = arith.constant 0 : index
    %4 = vector.load %arg0[%c0_4, %c0_5] : memref<8x32xf32, #tpu.memory_space<vmem>>, vector<8x32xf32>
    %c0_6 = arith.constant 0 : index
    %c0_7 = arith.constant 0 : index
    %5 = vector.load %arg2[%c0_6, %c0_7] : memref<32x64xf32, #tpu.memory_space<vmem>>, vector<32x64xf32>
    %cst = arith.constant dense<0.000000e+00> : vector<8x64xf32>
    %6 = tpu.matmul %4, %5, %cst {dimension_numbers = #tpu.dot_dimension_numbers<[1], [0], [0], [1], [0, 0, 1, 1], [], []>} : vector<8x32xf32>, vector<32x64xf32>, vector<8x64xf32> -> vector<8x64xf32>
    %7 = vector.broadcast %0 : vector<1x64xf32> to vector<8x64xf32>
    %8 = arith.addf %6, %7 : vector<8x64xf32>
    %cst_8 = arith.constant 0.000000e+00 : f32
    %9 = vector.broadcast %cst_8 : f32 to vector<8x64xf32>
    %10 = arith.maximumf %8, %9 : vector<8x64xf32>
    %c0_9 = arith.constant 0 : index
    %c0_10 = arith.constant 0 : index
    %11 = vector.load %arg3[%c0_9, %c0_10] : memref<64x96xf32, #tpu.memory_space<vmem>>, vector<64x96xf32>
    %cst_11 = arith.constant dense<0.000000e+00> : vector<8x96xf32>
    %12 = tpu.matmul %10, %11, %cst_11 {dimension_numbers = #tpu.dot_dimension_numbers<[1], [0], [0], [1], [0, 0, 1, 1], [], []>} : vector<8x64xf32>, vector<64x96xf32>, vector<8x96xf32> -> vector<8x96xf32>
    %13 = vector.broadcast %1 : vector<1x96xf32> to vector<8x96xf32>
    %14 = arith.addf %12, %13 : vector<8x96xf32>
    %c0_12 = arith.constant 0 : index
    %c0_13 = arith.constant 0 : index
    %15 = vector.load %arg9[%c0_12, %c0_13] : memref<8x96xf32, #tpu.memory_space<vmem>>, vector<8x96xf32>
    tpu.vector_store %arg9[%c0_12, %c0_13], %14 {strides = array<i32>} : memref<8x96xf32, #tpu.memory_space<vmem>>, vector<8x96xf32>,
    %16 = vector.shape_cast %2 : vector<1x32xf32> to vector<1x32xf32>
    %17 = vector.broadcast %16 : vector<1x32xf32> to vector<8x32xf32>
    %c0_14 = arith.constant 0 : index
    %c0_15 = arith.constant 0 : index
    %18 = vector.load %arg1[%c0_14, %c0_15] : memref<8x32xf32, #tpu.memory_space<vmem>>, vector<8x32xf32>
    %c0_i32 = arith.constant 0 : i32
    %c8_i32 = arith.constant 8 : i32
    %19 = arith.muli %c0_i32, %c8_i32 : i32
    %20 = tpu.assume_multiple %19, 8 : i32
    %c0_16 = arith.constant 0 : index
    %c0_17 = arith.constant 0 : index
    %21 = vector.load %arg4[%c0_16, %c0_17] : memref<32x96xf32, #tpu.memory_space<vmem>>, vector<32x96xf32>
    %cst_18 = arith.constant dense<0.000000e+00> : vector<8x96xf32>
    %22 = tpu.matmul %18, %21, %cst_18 {dimension_numbers = #tpu.dot_dimension_numbers<[1], [0], [0], [1], [0, 0, 1, 1], [], []>} : vector<8x32xf32>, vector<32x96xf32>, vector<8x96xf32> -> vector<8x96xf32>
    %23 = arith.index_cast %20 : i32 to index
    %c0_19 = arith.constant 0 : index
    %24 = vector.load %arg9[%23, %c0_19] : memref<8x96xf32, #tpu.memory_space<vmem>>, vector<8x96xf32>
    %25 = vector.extract_strided_slice %24 {offsets = [0, 0], sizes = [8, 64], strides = [1, 1]} : vector<8x96xf32> to vector<8x64xf32>
    %26 = vector.extract_strided_slice %22 {offsets = [0, 0], sizes = [8, 64], strides = [1, 1]} : vector<8x96xf32> to vector<8x64xf32>
    %27 = arith.addf %25, %26 : vector<8x64xf32>
    %cst_20 = arith.constant 5.000000e-01 : f32
    %28 = vector.broadcast %cst_20 : f32 to vector<8x64xf32>
    %29 = arith.mulf %28, %27 : vector<8x64xf32>
    %30 = math.tanh %29 : vector<8x64xf32>
    %cst_21 = arith.constant 5.000000e-01 : f32
    %31 = vector.broadcast %cst_21 : f32 to vector<8x64xf32>
    %32 = arith.mulf %31, %30 : vector<8x64xf32>
    %cst_22 = arith.constant 5.000000e-01 : f32
    %33 = vector.broadcast %cst_22 : f32 to vector<8x64xf32>
    %34 = arith.addf %32, %33 : vector<8x64xf32>
    %35 = vector.extract_strided_slice %34 {offsets = [0, 0], sizes = [8, 32], strides = [1, 1]} : vector<8x64xf32> to vector<8x32xf32>
    %36 = vector.extract_strided_slice %34 {offsets = [0, 32], sizes = [8, 32], strides = [1, 1]} : vector<8x64xf32> to vector<8x32xf32>
    %37 = vector.extract_strided_slice %24 {offsets = [0, 64], sizes = [8, 32], strides = [1, 1]} : vector<8x96xf32> to vector<8x32xf32>
    %38 = vector.extract_strided_slice %22 {offsets = [0, 64], sizes = [8, 32], strides = [1, 1]} : vector<8x96xf32> to vector<8x32xf32>
    %39 = arith.addf %38, %17 : vector<8x32xf32>
    %40 = arith.mulf %35, %39 : vector<8x32xf32>
    %41 = arith.addf %37, %40 : vector<8x32xf32>
    %42 = math.tanh %41 : vector<8x32xf32>
    %43 = arith.subf %18, %42 : vector<8x32xf32>
    %44 = arith.mulf %36, %43 : vector<8x32xf32>
    %45 = arith.addf %42, %44 : vector<8x32xf32>
    %46 = arith.index_cast %20 : i32 to index
    %c0_23 = arith.constant 0 : index
    %47 = vector.load %arg10[%46, %c0_23] : memref<8x32xf32, #tpu.memory_space<vmem>>, vector<8x32xf32>
    tpu.vector_store %arg10[%46, %c0_23], %45 {strides = array<i32>} : memref<8x32xf32, #tpu.memory_space<vmem>>, vector<8x32xf32>,
    %c1_i32 = arith.constant 1 : i32
    %c0_24 = arith.constant 0 : index
    %c0_25 = arith.constant 0 : index
    %48 = vector.load %arg8[%c0_24, %c0_25] : memref<8x32xf32, #tpu.memory_space<vmem>>, vector<8x32xf32>
    tpu.vector_store %arg8[%c0_24, %c0_25], %45 {strides = array<i32>} : memref<8x32xf32, #tpu.memory_space<vmem>>, vector<8x32xf32>,
    %c0_26 = arith.constant 0 : index
    %c0_27 = arith.constant 0 : index
    %49 = vector.load %arg10[%c0_26, %c0_27] : memref<8x32xf32, #tpu.memory_space<vmem>>, vector<8x32xf32>
    %cst_28 = arith.constant 0.000000e+00 : f32
    %50 = vector.broadcast %cst_28 : f32 to vector<8x32xf32>
    %51 = arith.maximumf %49, %50 : vector<8x32xf32>
    %c0_29 = arith.constant 0 : index
    %c0_30 = arith.constant 0 : index
    %52 = vector.load %arg5[%c0_29, %c0_30] : memref<32x16xf32, #tpu.memory_space<vmem>>, vector<32x16xf32>
    %cst_31 = arith.constant dense<0.000000e+00> : vector<8x16xf32>
    %53 = tpu.matmul %51, %52, %cst_31 {dimension_numbers = #tpu.dot_dimension_numbers<[1], [0], [0], [1], [0, 0, 1, 1], [], []>} : vector<8x32xf32>, vector<32x16xf32>, vector<8x16xf32> -> vector<8x16xf32>
    %54 = vector.broadcast %3 : vector<1x16xf32> to vector<8x16xf32>
    %55 = arith.addf %53, %54 : vector<8x16xf32>
    %c0_32 = arith.constant 0 : index
    %c0_33 = arith.constant 0 : index
    %56 = vector.load %arg7[%c0_32, %c0_33] : memref<8x16xf32, #tpu.memory_space<vmem>>, vector<8x16xf32>
    tpu.vector_store %arg7[%c0_32, %c0_33], %55 {strides = array<i32>} : memref<8x16xf32, #tpu.memory_space<vmem>>, vector<8x16xf32>,
    return
  }
}

</mosaic_0001>

<bundles_post_ra>
// kernel: tpu_custom_call.1
= control target key start
LH: loop header
LB: loop body
LE: loop exit
PB: predicated region body
PF: predicated region fallthrough
CT: control target
= control target key end

     0   :  { %14 = vsyncpa [#allocation5], 0  ;;  %s869_s0 = inlined_call_operand.vmem [shape: f32[8,32], index: 0, kind: input, shape index: {}]   ;;  %s870_s1 = inlined_call_operand.vmem [shape: f32[8,32], index: 1, kind: input, shape index: {}]   ;;  %s871_s2 = inlined_call_operand.vmem [shape: f32[32,64], index: 2, kind: input, shape index: {}]   ;;  %s872_s3 = inlined_call_operand.hbm [shape: f32[64,96], index: 3, kind: input, shape index: {}]   ;;  %s873_s4 = inlined_call_operand.hbm [shape: f32[32,96], index: 4, kind: input, shape index: {}]   ;;  %s874_s5 = inlined_call_operand.vmem [shape: f32[32,16], index: 5, kind: input, shape index: {}]   ;;  %s875_s6 = inlined_call_operand.vmem [shape: f32[4,128], index: 6, kind: input, shape index: {}]   ;;  %s876_s7 = inlined_call_operand.hbm [shape: f32[8,16], index: 7, kind: output, shape index: {0}]   ;;  %s877_s8 = inlined_call_operand.hbm [shape: f32[8,32], index: 8, kind: output, shape index: {1}]  }
   0x1   :  { %15 = vsyncpa [#allocation8], 0 }
   0x2   :  { %16 = vsyncpa [#allocation6], 0 }
   0x3   :  { %17 = vsyncpa [#allocation11], 0  ;;  %s699_s27 = smov [#allocation4]   ;;  %s603_s9 = scalar_lea.hbm %s872_s3, 1024 }
   0x4   :  { %s29_s28 = sshll.u32 %s699_s27, 4  ;;  %p604_p0 = scmp.ne.s32.totalorder %s872_s3, %s603_s9  ;;  %s30_s28 = int_to_ptr.vmem [resolvable:$true] %s29_s28 }
   0x5   :  { %p607_p1 = scmp.lt.u32.totalorder %s603_s9, %s872_s3 }
   0x7   :  { %p609_p2 = pnand %p607_p1, %p604_p0 }
   0x9   :  { %612 = shalt.err (!%p609_p2)
}
   0xa   :  { %s613_s14 = scalar_lea.vmem %s30_s28, 1024  ;;  %p618_p4 = scmp.lt.s32.totalorder %s30_s28, %s30_s28 }
   0xb   :  { %p614_p3 = scmp.ne.s32.totalorder %s30_s28, %s613_s14  ;;  %p619_p5 = scmp.lt.s32.totalorder %s613_s14, %s613_s14 }
   0xd   :  { %p620_p6 = por %p619_p5, %p618_p4 }
   0xf   :  { %p621_p7 = pnand %p620_p6, %p614_p3 }
  0x11   :  { %624 = shalt.err (!%p621_p7)
}
  0x12   :  { %s700_s15 = smov 128   ;;  %s701_s16 = smov 8  }
  0x13   :  { %35 = dma.hbm_to_vmem [thread:$0]  %s872_s3, 1024, %s30_s28, [#allocation5], %s700_s15, %s700_s15, %s701_s16  }
  0x14   :  { %s702_s19 = smov [#allocation7]   ;;  %s625_s23 = scalar_lea.hbm %s873_s4, 512 }
  0x15   :  { %s41_s20 = sshll.u32 %s702_s19, 4  ;;  %p626_p8 = scmp.ne.s32.totalorder %s873_s4, %s625_s23  ;;  %s42_s20 = int_to_ptr.vmem [resolvable:$true] %s41_s20 }
  0x16   :  { %p629_p9 = scmp.lt.u32.totalorder %s625_s23, %s873_s4 }
  0x18   :  { %p631_p10 = pnand %p629_p9, %p626_p8 }
  0x1a   :  { %634 = shalt.err (!%p631_p10)
}
  0x1b   :  { %s635_s29 = scalar_lea.vmem %s42_s20, 512  ;;  %p640_p12 = scmp.lt.s32.totalorder %s42_s20, %s42_s20 }
  0x1c   :  { %p636_p11 = scmp.ne.s32.totalorder %s42_s20, %s635_s29  ;;  %p641_p13 = scmp.lt.s32.totalorder %s635_s29, %s635_s29 }
  0x1e   :  { %p642_p0 = por %p641_p13, %p640_p12 }
  0x20   :  { %p643_p1 = pnand %p642_p0, %p636_p11 }
  0x22   :  { %646 = shalt.err (!%p643_p1)
}
  0x23   :  { %47 = dma.hbm_to_vmem [thread:$0]  %s873_s4, 512, %s42_s20, [#allocation8], %s700_s15, %s700_s15, %s701_s16  }
  0x24   :  { %691 = dma.done.wait [#allocation5], 1024  }
  0x25   :  { %692 = vsyncadd [#allocation5], 4294966272 }
  0x26   :  { %693 = dma.done.wait [#allocation8], 512  }
  0x27   :  { %694 = vsyncadd [#allocation8], 4294966784  ;;  %v703_v0 = vmov 0.0|0.0   ;;  %vm704_vm0 = vmmov 0   ;;  %v705_v1 = vmov 0.0   ;;  %v63_v2 = vld [vmem:[%s871_s2] sm:$0xff] }
  0x28   :  { %558 = vmatprep.subr.bf16.mxu0 %v703_v0  ;;  %514 = vmatprep.mubr.msk.f32.mxu0 %vm704_vm0, %v705_v1  ;;  %v64_v3 = vld [vmem:[%s871_s2 + $0x8] sm:$0xff]  ;;  %v65_v4 = vld [vmem:[%s871_s2 + $0x10] sm:$0xff]  ;;  %v66_v6 = vld [vmem:[%s871_s2 + $0x18] sm:$0xff]  ;;  %vm71_vm1 = vcmask 261120   ;;  %s706_s19 = smov 64   ;;  %vm158_vm2 = vcmask 523264  }
  0x29   :  { %564 = vmatprep.subr.bf16.mxu1 %v703_v0  ;;  %533 = vmatprep.mubr.msk.f32.mxu1 %vm704_vm0, %v705_v1  ;;  %v559_v5 = vpack.c.bf16 %v64_v3, %v63_v2  ;;  %v562_v7 = vpack.c.bf16 %v66_v6, %v65_v4  ;;  %v239_v8 = vld [vmem:[#allocation7] sm:$0xff]  ;;  %v147_v10 = vld [vmem:[#allocation4 + $0x8] sm:$0xff]  ;;  %v148_v13 = vld [vmem:[#allocation4 + $0x10] sm:$0xff]  ;;  %vm232_vm3 = vcmask 785408   ;;  %s707_s23 = smov 32   ;;  %s708_s9 = smov [#allocation10]  }
  0x2a   :  { %v146_v9 = vld [vmem:[#allocation4] sm:$0xff]  ;;  %v240_v11 = vld [vmem:[#allocation7 + $0x8] sm:$0xff]  ;;  %v149_v14 = vld [vmem:[#allocation4 + $0x18] sm:$0xff] }
  0x2b   :  { %560 = vmatpush3.bf16.msra.mxu0 %v559_v5  ;;  %v565_v12 = vpack.c.bf16 %v147_v10, %v146_v9  ;;  %v568_v15 = vpack.c.bf16 %v149_v14, %v148_v13  ;;  %v62_v16 = vld [vmem:[%s869_s0] sm:$0xff]  ;;  %v577_v17 = vpack.c.bf16 %v240_v11, %v239_v8  ;;  %v150_v18 = vld [vmem:[#allocation4 + $0x20] sm:$0xff]  ;;  %v151_v19 = vld [vmem:[#allocation4 + $0x28] sm:$0xff] }
  0x2c   :  { %561 = vmatprep.subr.bf16.mxu0 %v703_v0  ;;  %v241_v20 = vld [vmem:[#allocation7 + $0x10] sm:$0xff]  ;;  %v242_v21 = vld [vmem:[#allocation7 + $0x18] sm:$0xff]  ;;  %v571_v22 = vpack.c.bf16 %v151_v19, %v150_v18  ;;  %v363_v59 = vld [vmem:[%s874_s5 + $0x10] sm:$0xff] }
  0x2d   :  { %566 = vmatpush3.bf16.msra.mxu1 %v565_v12  ;;  %v580_v23 = vpack.c.bf16 %v242_v21, %v241_v20  ;;  %v238_v24 = vld [vmem:[%s870_s1] sm:$0xff]  ;;  %v153_v26 = vld [vmem:[#allocation4 + $0x38] sm:$0xff]  ;;  %v364_v61 = vld [vmem:[%s874_s5 + $0x18] sm:$0xff] }
  0x2e   :  { %567 = vmatprep.subr.bf16.mxu1 %v703_v0  ;;  %v152_v25 = vld [vmem:[#allocation4 + $0x30] sm:$0xff]  ;;  %v362_v58 = vld [vmem:[%s874_s5 + $0x8] sm:$0xff]  ;;  %v586_v62 = vpack.c.bf16 %v364_v61, %v363_v59 }
  0x2f   :  { %563 = vmatpush3.bf16.msra.mxu0 %v562_v7  ;;  %v574_v27 = vpack.c.bf16 %v153_v26, %v152_v25  ;;  %v478_v28 = vld [vmem:[%s875_s6 + $0x2] ss:$0 sm:$0xff]  ;;  %v474_v29 = vld [vmem:[%s875_s6] ss:$0 sm:$0xff]  ;;  %v476_v38 = vld [vmem:[%s875_s6 + $0x1] ss:$0 sm:$0xff] }
  0x30   :  { %576 = vmatprep.subr.bf16.mxu0 %v703_v0  ;;  %323 = vrot.lane.b32.xlu0 %v478_v28, %s706_s19  ;;  %v361_v57 = vld [vmem:[%s874_s5] sm:$0xff]  ;;  %s460_s5 = sshll.u32 %s708_s9, 4  ;;  %s461_s5 = int_to_ptr.vmem [resolvable:$true] %s460_s5 }
  0x31   :  { %569 = vmatpush3.bf16.msra.mxu1 %v568_v15  ;;  %v583_v60 = vpack.c.bf16 %v362_v58, %v361_v57  ;;  %s647_s4 = scalar_lea.vmem %s461_s5, 128  ;;  %p652_p3 = scmp.lt.s32.totalorder %s461_s5, %s461_s5 }
  0x32   :  { %515 = vmatmul.mubr.msk.f32.vlgmr.msra.gmra.mrb[0].mxu0 %vm71_vm1, %v62_v16  ;;  %570 = vmatprep.subr.bf16.mxu1 %v703_v0  ;;  %p648_p2 = scmp.ne.s32.totalorder %s461_s5, %s647_s4  ;;  %p653_p4 = scmp.lt.s32.totalorder %s647_s4, %s647_s4 }
  0x33   :  { %578 = vmatpush3.bf16.msra.mxu0 %v577_v17  ;;  %544 = vmatprep.mubr.msk.f32.mxu0 %vm704_vm0, %v705_v1 }
  0x34   :  { %579 = vmatprep.subr.bf16.mxu0 %v703_v0  ;;  %p654_p5 = por %p653_p4, %p652_p3 }
  0x35   :  { %572 = vmatpush3.bf16.msra.mxu1 %v571_v22 }
  0x36   :  { %573 = vmatprep.subr.bf16.mxu1 %v703_v0  ;;  %p655_p6 = pnand %p654_p5, %p648_p2 }
  0x37   :  { %581 = vmatpush3.bf16.msra.mxu0 %v580_v23 }
  0x38   :  { %582 = vmatprep.subr.bf16.mxu0 %v703_v0 }
  0x39   :  { %575 = vmatpush3.bf16.msra.mxu1 %v574_v27 }
  0x3a   :  { %545 = vmatmul.mubr.msk.f32.vlgmr.msra.gmra.mrb[2].mxu0 %vm71_vm1, %v238_v24 }
  0x3b   :  { %555 = vmatprep.mubr.msk.f32.mxu0 %vm704_vm0, %v705_v1  ;;  %584 = vmatpush3.bf16.msra.mxu0 %v583_v60 }
  0x3c   :  { %585 = vmatprep.subr.bf16.mxu0 %v703_v0 }
  0x3f   :  { %587 = vmatpush3.bf16.msra.mxu0 %v586_v62 }
  0xa2   :  { %v324_v34 = vpop.permute.xlu0 %323 }
 0x105   :  { %v141_v30 = vpop.f32.mrb[0].mxu0 }
 0x106   :  { %v142_v31 = vadd.f32 %v474_v29, %v141_v30  ;;  %v516_v32 = vpop.f32.mrb[1].mxu0 }
 0x108   :  { %v145_v33 = vmax.f32 %v142_v31, 0.0 }
 0x10a   :  { %534 = vmatmul.mubr.msk.f32.vlgmr.msra.gmra.mrb[0].mxu1 %vm158_vm2, %v145_v33 }
 0x10d   :  { %v312_v35 = vpop.f32.mrb[2].mxu0 }
 0x10e   :  { %v546_v36 = vpop.f32.mrb[3].mxu0  ;;  %v326_v37 = vadd.f32 %v324_v34, %v312_v35 }
 0x110   :  { %328 = vrot.lane.b32.xlu0 %v326_v37, %s706_s19 }
 0x182   :  { %v329_v47 = vpop.permute.xlu0 %328 }
 0x1dd   :  { %v228_v39 = vpop.f32.mrb[0].mxu1 }
 0x1de   :  { %v229_v40 = vadd.f32 %v476_v38, %v228_v39  ;;  %v535_v41 = vpop.f32.mrb[1].mxu1 }
 0x1e0   :  { %233 = vst.msk [vmem:[#allocation2] sm:$0xff] %vm232_vm3, %v229_v40 }
 0x1e7   :  { %v316_v42 = vld [vmem:[#allocation2] sm:$0xff] }
 0x1e8   :  { %v317_v43 = vadd.f32 %v316_v42, %v312_v35 }
 0x1ea   :  { %v318_v44 = vmul.f32 0.5, %v317_v43 }
 0x1ec   :  { %599 = vtanh.f32 %v318_v44 }
 0x1f6   :  { %v600_v45 = vpop.eup %599 }
 0x1f7   :  { %v320_v46 = vmul.f32 0.5, %v600_v45 }
 0x1f9   :  { %v321_v48 = vadd.f32 0.5, %v320_v46 }
 0x1fb   :  { %v331_v49 = vmul.f32 %v329_v47, %v321_v48 }
 0x1fd   :  { %333 = vrot.lane.b32.xlu1 %v331_v49, %s706_s19 }
 0x26f   :  { %v334_v50 = vpop.permute.xlu1 %333 }
 0x270   :  { %v336_v51 = vadd.f32 %v334_v50, %v316_v42 }
 0x272   :  { %601 = vtanh.f32 %v336_v51 }
 0x27c   :  { %v602_v52 = vpop.eup %601 }
 0x27d   :  { %339 = vrot.lane.b32.xlu1 %v602_v52, %s706_s19 }
 0x2ef   :  { %v340_v53 = vpop.permute.xlu1 %339 }
 0x2f0   :  { %v342_v54 = vsub.f32 %v238_v24, %v340_v53 }
 0x2f2   :  { %344 = vrot.lane.b32.xlu0 %v342_v54, %s707_s23 }
 0x364   :  { %v345_v55 = vpop.permute.xlu0 %344 }
 0x365   :  { %v347_v56 = vmul.f32 %v345_v55, %v321_v48 }
 0x367   :  { %349 = vrot.lane.b32.xlu1 %v347_v56, %s707_s23 }
 0x3d9   :  { %v350_v63 = vpop.permute.xlu1 %349 }
 0x3da   :  { %v352_v1 = vadd.f32 %v602_v52, %v350_v63 }
 0x3dc   :  { %354 = vrot.lane.b32.xlu0 %v352_v1, %s706_s19 }
 0x44e   :  { %v355_v2 = vpop.permute.xlu0 %354 }
 0x44f   :  { %357 = vst.msk [vmem:[#allocation3] sm:$0xff] %vm71_vm1, %v355_v2  ;;  %358 = vst.msk [vmem:[#allocation10] sm:$0xff] %vm71_vm1, %v355_v2 }
 0x456   :  { %v359_v3 = vld [vmem:[#allocation3] sm:$0xff] }
 0x457   :  { %v360_v4 = vmax.f32 %v359_v3, 0.0 }
 0x459   :  { %556 = vmatmul.mubr.msk.f32.vlgmr.msra.gmra.mrb[4].mxu0 %vm71_vm1, %v360_v4 }
 0x45a   :  { %658 = shalt.err (!%p655_p6)
}
 0x45b   :  { %s659_s12 = scalar_lea.hbm %s877_s8, 128 }
 0x45c   :  { %p660_p7 = scmp.ne.s32.totalorder %s877_s8, %s659_s12  ;;  %p663_p8 = scmp.lt.u32.totalorder %s659_s12, %s877_s8 }
 0x45e   :  { %p665_p9 = pnand %p663_p8, %p660_p7 }
 0x460   :  { %668 = shalt.err (!%p665_p9)
}
 0x461   :  { %463 = dma.vmem_to_hbm [thread:$0]  %s461_s5, 128, %s877_s8, [#allocation11]   ;;  %v480_v0 = vld [vmem:[%s875_s6 + $0x3] ss:$0 sm:$0xff]  ;;  %vm442_vm4 = vcmask 130048  }
 0x462   :  { %s709_s19 = smov [#allocation9]  }
 0x463   :  { %s450_s1 = sshll.u32 %s709_s19, 4  ;;  %s451_s1 = int_to_ptr.vmem [resolvable:$true] %s450_s1 }
 0x464   :  { %s669_s20 = scalar_lea.vmem %s451_s1, 128  ;;  %p674_p11 = scmp.lt.s32.totalorder %s451_s1, %s451_s1 }
 0x465   :  { %p670_p10 = scmp.ne.s32.totalorder %s451_s1, %s669_s20  ;;  %p675_p12 = scmp.lt.s32.totalorder %s669_s20, %s669_s20 }
 0x467   :  { %p676_p13 = por %p675_p12, %p674_p11 }
 0x469   :  { %p677_p0 = pnand %p676_p13, %p670_p10 }
 0x52c   :  { %v438_v5 = vpop.f32.mrb[4].mxu0 }
 0x52d   :  { %v439_v6 = vadd.f32 %v480_v0, %v438_v5  ;;  %v557_v7 = vpop.f32.mrb[5].mxu0 }
 0x52f   :  { %443 = vst.msk [vmem:[#allocation9] sm:$0xff] %vm442_vm4, %v439_v6 }
 0x530   :  { %680 = shalt.err (!%p677_p0)
}
 0x531   :  { %s681_s22 = scalar_lea.hbm %s876_s7, 128 }
 0x532   :  { %p682_p1 = scmp.ne.s32.totalorder %s876_s7, %s681_s22  ;;  %p685_p2 = scmp.lt.u32.totalorder %s681_s22, %s876_s7 }
 0x534   :  { %p687_p3 = pnand %p685_p2, %p682_p1 }
 0x536   :  { %690 = shalt.err (!%p687_p3)
}
 0x537   :  { %453 = dma.vmem_to_hbm [thread:$0]  %s451_s1, 128, %s876_s7, [#allocation6]  }
 0x538   :  { %695 = dma.done.wait [#allocation6], 128  }
 0x539   :  { %696 = vsyncadd [#allocation6], 4294967168 }
 0x53a   :  { %697 = dma.done.wait [#allocation11], 128  }
 0x53b   :  { %698 = vsyncadd [#allocation11], 4294967168 }
 0x53c   :  { %470 = vsyncpa [#allocation5], 1 }
 0x53d   :  { %471 = vsyncpa [#allocation8], 1 }
 0x53e   :  { %472 = vsyncpa [#allocation6], 1 }
 0x53f   :  { %473 = vsyncpa [#allocation11], 1 }

</bundles_post_ra>
